<compile_context>
chip_gen: v7x
topology: tpu7x:2x2x1
jax: 0.10.0
libtpu: 0.0.40
codegen_flags: <defaults>
</compile_context>

<pallas_src>
import functools

import jax
import jax.numpy as jnp
from jax.experimental import pallas as pl
from jax.experimental.pallas import tpu as pltpu

LANE = 128
SUBLANE = 8


# ----------------------------------------------------------------------------------
# Pallas kernel: streaming sum(dist_map * prediction) -> per-core (8,128) partials
# ----------------------------------------------------------------------------------
def _boundary_kernel(p_ref, d_ref, o_ref, *, steps_per_core, last_block,
                     total_rows, need_mask):
    c = pl.program_id(0)          # core-split axis ("parallel")
    i = pl.program_id(1)          # row-walk / reduction axis ("arbitrary")

    @pl.when(i == 0)
    def _init():
        # Output block is the accumulator; it stays VMEM-resident across axis 1.
        o_ref[...] = jnp.zeros_like(o_ref)

    # Cast in-kernel (supports bf16 inputs without wrapper-side materialization).
    p = p_ref[...].astype(jnp.float32)
    d = d_ref[...].astype(jnp.float32)
    br = p.shape[0]

    def _accum(prod):
        # Fold (br,128) onto a single (8,128) vreg: pure VALU adds, no XLU, no
        # per-step scratch vload/vstore of a (br,128) accumulator.
        o_ref[0] += prod.reshape(br // SUBLANE, SUBLANE, LANE).sum(axis=0)

    if need_mask:
        g = c * steps_per_core + i     # global block index

        @pl.when(g < last_block)
        def _full():
            _accum(p * d)

        @pl.when(g == last_block)
        def _partial():
            # Only the final (partial) block pays the iota/compare/select. The select
            # is applied directly to the product so OOB garbage (possibly NaN/Inf) is
            # discarded before the accumulate.
            row_ids = g * br + jax.lax.broadcasted_iota(jnp.int32, (br, LANE), 0)
            _accum(jnp.where(row_ids < total_rows, p * d, 0.0))
    else:
        _accum(p * d)


def _choose_grid(rows, block_rows, sub):
    """Pick (num_splits, steps_per_core, block_rows) for a (rows, 128) slab.

    Prefers a 2-way, load-balanced row split (dual TensorCore on v7x) whenever it can
    be done without creating a fully-empty trailing block."""
    br = min(block_rows, rows)
    steps = pl.cdiv(rows, br)
    if steps >= 2:
        steps_even = steps + (steps % 2)
        br2 = pl.cdiv(rows, steps_even)
        br2 = min(pl.cdiv(br2, sub) * sub, rows)
        blocks = pl.cdiv(rows, br2)
        if blocks % 2 == 0 and (blocks - 1) * br2 < rows:
            return 2, blocks // 2, br2
    return 1, steps, br


def boundary_loss_pallas(prediction, dist_map, *, block_rows=8192, force_pallas=False):
    """Pallas implementation of BoundaryLoss.forward's reduction:
    mean(dist_map * prediction)."""
    assert prediction.shape == dist_map.shape
    n = prediction.size
    assert n > 0

    # Small-input fast path: pallas_call launch + single grid step overhead dominates
    # below ~1 MiB of operands; XLA fusion is strictly faster there.
    in_bytes = n * (prediction.dtype.itemsize + dist_map.dtype.itemsize)
    if not force_pallas and in_bytes < (1 << 20):
        return jnp.mean(dist_map.astype(jnp.float32) * prediction.astype(jnp.float32))

    # Sublane granularity: 16 rows for 16-bit dtypes (bf16 packing), 8 for 32-bit.
    sub = 16 if min(prediction.dtype.itemsize, dist_map.dtype.itemsize) < 4 else SUBLANE
    block_rows = max(sub, (block_rows // sub) * sub)

    p_flat = prediction.reshape(-1)
    d_flat = dist_map.reshape(-1)

    # Tiny zero-pad (edge case only) so the flat arrays reshape to a lane-dense slab
    # with a row count divisible by the sublane granularity. Zeros contribute nothing.
    chunk = sub * LANE
    rem = n % chunk
    if rem:
        pad = chunk - rem
        p_flat = jnp.pad(p_flat, (0, pad))
        d_flat = jnp.pad(d_flat, (0, pad))

    rows = p_flat.size // LANE
    p2 = p_flat.reshape(rows, LANE)   # reshape of contiguous flat array: free
    d2 = d_flat.reshape(rows, LANE)

    num_splits, steps_per_core, br = _choose_grid(rows, block_rows, sub)
    total_blocks = num_splits * steps_per_core
    need_mask = (total_blocks * br != rows)

    kernel = functools.partial(
        _boundary_kernel,
        steps_per_core=steps_per_core,
        last_block=total_blocks - 1,
        total_rows=rows,
        need_mask=need_mask,
    )

    partials = pl.pallas_call(
        kernel,
        out_shape=jax.ShapeDtypeStruct((num_splits, SUBLANE, LANE), jnp.float32),
        grid_spec=pltpu.PrefetchScalarGridSpec(
            num_scalar_prefetch=0,
            grid=(num_splits, steps_per_core),
            in_specs=[
                pl.BlockSpec((br, LANE), lambda c, i: (c * steps_per_core + i, 0)),
                pl.BlockSpec((br, LANE), lambda c, i: (c * steps_per_core + i, 0)),
            ],
            out_specs=pl.BlockSpec((1, SUBLANE, LANE), lambda c, i: (c, 0, 0)),
        ),
        compiler_params=pltpu.CompilerParams(
            # Outer axis: independent per-core partials (sharded across TCs on v7x).
            # Inner axis: reduction carried in the resident output block.
            dimension_semantics=("parallel", "arbitrary"),
            vmem_limit_bytes=32 * 1024 * 1024,
        ),
    )(p2, d2)

    # Single tiny cross-lane reduction of the per-core (8,128) partials, once per call.
    return jnp.sum(partials) * (1.0 / float(n))


# ----------------------------------------------------------------------------------
# Distance-map construction (plain JAX; matches scipy.ndimage.distance_transform_edt
# applied to the full N-D array, as in the PyTorch module).
# ----------------------------------------------------------------------------------
def _edt_to_zero(is_nonzero, coords, col_block=4096):
    """Exact (brute force, column-blocked) Euclidean distance transform.
    For each voxel: 0 if is_nonzero[v] is False, else distance to nearest False voxel.
    Streams the candidate set in blocks so no (n, n) matrix is ever materialized."""
    # TODO(synk): for very large inputs a separable (per-axis) EDT would reduce the
    # O(n^2) compute; kept exact brute force here, streamed to bound memory.
    n, ndim = coords.shape
    bg = jnp.logical_not(is_nonzero)

    cb = min(col_block, n)
    n_pad = pl.cdiv(n, cb) * cb
    coords_p = jnp.pad(coords, ((0, n_pad - n), (0, 0)))
    bg_p = jnp.pad(bg.astype(jnp.int32), (0, n_pad - n))   # padded entries -> 0 (ignored)
    num_blocks = n_pad // cb

    def body(b, best):
        start = b * cb
        c_blk = jax.lax.dynamic_slice(coords_p, (start, 0), (cb, ndim))
        m_blk = jax.lax.dynamic_slice(bg_p, (start,), (cb,)) > 0
        d2 = jnp.zeros((n, cb), jnp.float32)
        for k in range(ndim):
            diff = coords[:, k][:, None] - c_blk[:, k][None, :]
            d2 = d2 + diff * diff
        d2 = jnp.where(m_blk[None, :], d2, jnp.inf)
        return jnp.minimum(best, jnp.min(d2, axis=1))

    best = jax.lax.fori_loop(0, num_blocks, body,
                             jnp.full((n,), jnp.inf, jnp.float32))
    best = jnp.where(jnp.isinf(best), 0.0, best)   # no background voxels at all
    dist = jnp.sqrt(best)
    return jnp.where(bg, 0.0, dist)


def create_dist_map(target):
    """JAX port of BoundaryLoss.create_dist_map (EDT over the full N-D array)."""
    # TODO(synk): distance_transform_edt has no clean Pallas equivalent (sequential,
    # data-dependent scans); it is computed in plain JAX outside the kernel.
    shape = target.shape
    mask = target.reshape(-1) != 0
    grids = jnp.meshgrid(
        *[jnp.arange(s, dtype=jnp.float32) for s in shape], indexing="ij"
    )
    coords = jnp.stack([g.reshape(-1) for g in grids], axis=-1)  # (n, ndim)
    mask_f = mask.astype(jnp.float32)
    posdis = (_edt_to_zero(mask, coords) - 1.0) * mask_f
    negdis = _edt_to_zero(jnp.logical_not(mask), coords) * (1.0 - mask_f)
    return (negdis - posdis).reshape(shape)


def boundary_loss(prediction, target, *, block_rows=8192, force_pallas=False):
    """Full BoundaryLoss.forward: build dist map from target, then Pallas reduction.
    Note: dist_map could be cast to bf16 here to halve HBM bytes of that operand, but
    distances > ~256 would lose integer precision, so it is kept in f32."""
    dist_map = create_dist_map(target)
    return boundary_loss_pallas(prediction, dist_map,
                                block_rows=block_rows, force_pallas=force_pallas)


def boundary_loss_ref(prediction, target):
    dist_map = create_dist_map(target)
    return jnp.mean(dist_map.astype(jnp.float32) * prediction.astype(jnp.float32))


if __name__ == "__main__":
    key = jax.random.PRNGKey(0)
    kp, kt, kp2, kd2 = jax.random.split(key, 4)

    # Test 1: full BoundaryLoss forward at the module's small NCHW shape
    # (batch=2, channels=4, spatial=16x16). force_pallas exercises the kernel even
    # though the small-input fast path would normally take over at this size.
    prediction = jax.random.normal(kp, (2, 4, 16, 16), dtype=jnp.float32)
    target = (jax.random.uniform(kt, (2, 4, 16, 16)) > 0.5).astype(jnp.float32)

    loss = boundary_loss(prediction, target, force_pallas=True)
    loss = jax.block_until_ready(loss)
    ref = boundary_loss_ref(prediction, target)
    assert jnp.allclose(loss, ref, atol=1e-5, rtol=1e-5), (loss, ref)

    # Test 2: exercise the tiled / dual-split / ragged-mask kernel path on a shape
    # whose flat size is not a multiple of 1024 (synthetic dist map; reduction only).
    pred2 = jax.random.normal(kp2, (2, 4, 40, 40), dtype=jnp.float32)
    dmap2 = jax.random.uniform(kd2, (2, 4, 40, 40), minval=-3.0, maxval=3.0)
    out2 = boundary_loss_pallas(pred2, dmap2, block_rows=32, force_pallas=True)
    out2 = jax.block_until_ready(out2)
    ref2 = jnp.mean(dmap2.astype(jnp.float32) * pred2.astype(jnp.float32))
    assert jnp.allclose(out2, ref2, atol=1e-5, rtol=1e-4), (out2, ref2)

    print("KERNEL_OK")
</pallas_src>

<mosaic_0001>
module attributes {stable_mosaic.version = 11 : i64} {
  func.func @_boundary_kernel(%arg0: i32, %arg1: i32, %arg2: memref<16x128xf32, #tpu.memory_space<vmem>>, %arg3: memref<16x128xf32, #tpu.memory_space<vmem>>, %arg4: memref<1x8x128xf32, #tpu.memory_space<vmem>>) attributes {dimension_semantics = [#tpu.dimension_semantics<parallel>, #tpu.dimension_semantics<arbitrary>], iteration_bounds = array<i64: 1, 1>, scalar_prefetch = 0 : i64, scratch_operands = 0 : i64, tpu.core_type = #tpu.core_type<tc>, window_params = [{transform_indices = @transform_0, window_bounds = array<i64: 16, 128>}, {transform_indices = @transform_1, window_bounds = array<i64: 16, 128>}, {transform_indices = @transform_2, window_bounds = array<i64: 1, 8, 128>}]} {
    %c0_i32 = arith.constant 0 : i32
    %0 = arith.cmpi eq, %arg1, %c0_i32 : i32
    %1 = arith.extui %0 : i1 to i32
    %c0_i32_0 = arith.constant 0 : i32
    %2 = arith.cmpi ne, %1, %c0_i32_0 : i32
    scf.if %2 {
      %cst_10 = arith.constant 0.000000e+00 : f32
      %14 = vector.broadcast %cst_10 : f32 to vector<1x8x128xf32>
      %c0_11 = arith.constant 0 : index
      %c0_12 = arith.constant 0 : index
      %c0_13 = arith.constant 0 : index
      %15 = vector.load %arg4[%c0_11, %c0_12, %c0_13] : memref<1x8x128xf32, #tpu.memory_space<vmem>>, vector<1x8x128xf32>
      tpu.vector_store %arg4[%c0_11, %c0_12, %c0_13], %14 {strides = array<i32>} : memref<1x8x128xf32, #tpu.memory_space<vmem>>, vector<1x8x128xf32>,
    } else {
    }
    %c0 = arith.constant 0 : index
    %c0_1 = arith.constant 0 : index
    %3 = vector.load %arg2[%c0, %c0_1] : memref<16x128xf32, #tpu.memory_space<vmem>>, vector<16x128xf32>
    %c0_2 = arith.constant 0 : index
    %c0_3 = arith.constant 0 : index
    %4 = vector.load %arg3[%c0_2, %c0_3] : memref<16x128xf32, #tpu.memory_space<vmem>>, vector<16x128xf32>
    %5 = arith.mulf %3, %4 : vector<16x128xf32>
    %c0_4 = arith.constant 0 : index
    %c0_5 = arith.constant 0 : index
    %c0_6 = arith.constant 0 : index
    %6 = vector.load %arg4[%c0_4, %c0_5, %c0_6] : memref<1x8x128xf32, #tpu.memory_space<vmem>>, vector<1x8x128xf32>
    %7 = vector.shape_cast %6 : vector<1x8x128xf32> to vector<8x128xf32>
    %8 = vector.shape_cast %5 : vector<16x128xf32> to vector<2x8x128xf32>
    %cst = arith.constant dense<0.000000e+00> : vector<8x128xf32>
    %9 = vector.multi_reduction <add>, %8, %cst [0] : vector<2x8x128xf32> to vector<8x128xf32>
    %10 = arith.addf %7, %9 : vector<8x128xf32>
    %c0_7 = arith.constant 0 : index
    %c0_8 = arith.constant 0 : index
    %c0_9 = arith.constant 0 : index
    %11 = vector.load %arg4[%c0_7, %c0_8, %c0_9] : memref<1x8x128xf32, #tpu.memory_space<vmem>>, vector<1x8x128xf32>
    %12 = vector.shape_cast %11 : vector<1x8x128xf32> to vector<8x128xf32>
    %13 = vector.shape_cast %10 : vector<8x128xf32> to vector<1x8x128xf32>
    tpu.vector_store %arg4[%c0_7, %c0_8, %c0_9], %13 {strides = array<i32>} : memref<1x8x128xf32, #tpu.memory_space<vmem>>, vector<1x8x128xf32>,
    return
  }
  func.func @transform_0(%arg0: i32, %arg1: i32) -> (i32, i32) {
    %c1_i32 = arith.constant 1 : i32
    %0 = arith.muli %arg0, %c1_i32 : i32
    %1 = arith.addi %0, %arg1 : i32
    %c0_i32 = arith.constant 0 : i32
    %c0_i32_0 = arith.constant 0 : i32
    return %1, %c0_i32 : i32, i32
  }
  func.func @transform_1(%arg0: i32, %arg1: i32) -> (i32, i32) {
    %c1_i32 = arith.constant 1 : i32
    %0 = arith.muli %arg0, %c1_i32 : i32
    %1 = arith.addi %0, %arg1 : i32
    %c0_i32 = arith.constant 0 : i32
    %c0_i32_0 = arith.constant 0 : i32
    return %1, %c0_i32 : i32, i32
  }
  func.func @transform_2(%arg0: i32, %arg1: i32) -> (i32, i32, i32) {
    %c0_i32 = arith.constant 0 : i32
    %c0_i32_0 = arith.constant 0 : i32
    %c0_i32_1 = arith.constant 0 : i32
    return %arg0, %c0_i32, %c0_i32_0 : i32, i32, i32
  }
}

</mosaic_0001>

<bundles_post_ra>
// kernel: tpu_custom_call.1
= control target key start
LH: loop header
LB: loop body
LE: loop exit
PB: predicated region body
PF: predicated region fallthrough
CT: control target
= control target key end

     0   :  { %7 = vsyncpa [#allocation3], 0  ;;  %s217_s0 = inlined_call_operand.hbm [shape: f32[16,128], index: 0, kind: input, shape index: {}]   ;;  %s218_s1 = inlined_call_operand.hbm [shape: f32[16,128], index: 1, kind: input, shape index: {}]   ;;  %s219_s2 = inlined_call_operand.hbm [shape: f32[1,8,128], index: 2, kind: output, shape index: {}]  }
   0x1   :  { %8 = vsyncpa [#allocation6], 0 }
   0x2   :  { %9 = vsyncpa [#allocation4], 0  ;;  %s161_s9 = smov [#allocation2]   ;;  %s89_s13 = scalar_lea.hbm %s217_s0, 256 }
   0x3   :  { %s19_s10 = sshll.u32 %s161_s9, 4  ;;  %p90_p0 = scmp.ne.s32.totalorder %s217_s0, %s89_s13  ;;  %s20_s10 = int_to_ptr.vmem [resolvable:$true] %s19_s10 }
   0x4   :  { %p93_p1 = scmp.lt.u32.totalorder %s89_s13, %s217_s0 }
   0x6   :  { %p95_p2 = pnand %p93_p1, %p90_p0 }
   0x8   :  { %98 = shalt.err (!%p95_p2)
}
   0x9   :  { %s99_s18 = scalar_lea.vmem %s20_s10, 256  ;;  %p104_p4 = scmp.lt.s32.totalorder %s20_s10, %s20_s10 }
   0xa   :  { %p100_p3 = scmp.ne.s32.totalorder %s20_s10, %s99_s18  ;;  %p105_p5 = scmp.lt.s32.totalorder %s99_s18, %s99_s18 }
   0xc   :  { %p106_p6 = por %p105_p5, %p104_p4 }
   0xe   :  { %p107_p7 = pnand %p106_p6, %p100_p3 }
  0x10   :  { %110 = shalt.err (!%p107_p7)
}
  0x11   :  { %s162_s19 = smov 128   ;;  %s163_s20 = smov 8  }
  0x12   :  { %25 = dma.hbm_to_vmem [thread:$0]  %s217_s0, 256, %s20_s10, [#allocation3], %s162_s19, %s162_s19, %s163_s20  }
  0x13   :  { %s164_s23 = smov [#allocation5]   ;;  %s111_s27 = scalar_lea.hbm %s218_s1, 256 }
  0x14   :  { %s35_s24 = sshll.u32 %s164_s23, 4  ;;  %p112_p8 = scmp.ne.s32.totalorder %s218_s1, %s111_s27  ;;  %s36_s24 = int_to_ptr.vmem [resolvable:$true] %s35_s24 }
  0x15   :  { %p115_p9 = scmp.lt.u32.totalorder %s111_s27, %s218_s1 }
  0x17   :  { %p117_p10 = pnand %p115_p9, %p112_p8 }
  0x19   :  { %120 = shalt.err (!%p117_p10)
}
  0x1a   :  { %s121_s4 = scalar_lea.vmem %s36_s24, 256  ;;  %p126_p12 = scmp.lt.s32.totalorder %s36_s24, %s36_s24 }
  0x1b   :  { %p122_p11 = scmp.ne.s32.totalorder %s36_s24, %s121_s4  ;;  %p127_p13 = scmp.lt.s32.totalorder %s121_s4, %s121_s4 }
  0x1d   :  { %p128_p0 = por %p127_p13, %p126_p12 }
  0x1f   :  { %p129_p1 = pnand %p128_p0, %p122_p11 }
  0x21   :  { %132 = shalt.err (!%p129_p1)
}
  0x22   :  { %41 = dma.hbm_to_vmem [thread:$0]  %s218_s1, 256, %s36_s24, [#allocation6], %s162_s19, %s162_s19, %s163_s20  }
  0x23   :  { %155 = dma.done.wait [#allocation3], 256  }
  0x24   :  { %156 = vsyncadd [#allocation3], 4294967040 }
  0x25   :  { %157 = dma.done.wait [#allocation6], 256  }
  0x26   :  { %158 = vsyncadd [#allocation6], 4294967040  ;;  %v57_v0 = vld [vmem:[#allocation2] sm:$0xff]  ;;  %v58_v1 = vld [vmem:[#allocation2 + $0x8] sm:$0xff]  ;;  %s165_s6 = smov [#allocation7]  }
  0x27   :  { %v59_v2 = vld [vmem:[#allocation5] sm:$0xff]  ;;  %v60_v3 = vld [vmem:[#allocation5 + $0x8] sm:$0xff]  ;;  %s73_s7 = sshll.u32 %s165_s6, 4  ;;  %s74_s7 = int_to_ptr.vmem [resolvable:$true] %s73_s7 }
  0x28   :  { %v61_v4 = vmul.f32 %v59_v2, %v57_v0  ;;  %v62_v5 = vmul.f32 %v60_v3, %v58_v1  ;;  %s133_s8 = scalar_lea.vmem %s74_s7, 128  ;;  %p138_p3 = scmp.lt.s32.totalorder %s74_s7, %s74_s7 }
  0x29   :  { %p134_p2 = scmp.ne.s32.totalorder %s74_s7, %s133_s8  ;;  %p139_p4 = scmp.lt.s32.totalorder %s133_s8, %s133_s8 }
  0x2a   :  { %v64_v6 = vadd.f32 %v62_v5, %v61_v4 }
  0x2b   :  { %p140_p5 = por %p139_p4, %p138_p3 }
  0x2c   :  { %66 = vst [vmem:[#allocation7] sm:$0xff] %v64_v6 }
  0x2d   :  { %p141_p6 = pnand %p140_p5, %p134_p2 }
  0x2f   :  { %144 = shalt.err (!%p141_p6)
}
  0x30   :  { %s145_s10 = scalar_lea.hbm %s219_s2, 128 }
  0x31   :  { %p146_p7 = scmp.ne.s32.totalorder %s219_s2, %s145_s10  ;;  %p149_p8 = scmp.lt.u32.totalorder %s145_s10, %s219_s2 }
  0x33   :  { %p151_p9 = pnand %p149_p8, %p146_p7 }
  0x35   :  { %154 = shalt.err (!%p151_p9)
}
  0x36   :  { %76 = dma.vmem_to_hbm [thread:$0]  %s74_s7, 128, %s219_s2, [#allocation4]  }
  0x37   :  { %159 = dma.done.wait [#allocation4], 128  }
  0x38   :  { %160 = vsyncadd [#allocation4], 4294967168 }
  0x39   :  { %80 = vsyncpa [#allocation3], 1 }
  0x3a   :  { %81 = vsyncpa [#allocation6], 1 }
  0x3b   :  { %82 = vsyncpa [#allocation4], 1 }

</bundles_post_ra>
